<compile_context>
chip_gen: v7x
topology: tpu7x:2x2x1
jax: 0.10.0
libtpu: 0.0.40
codegen_flags: <defaults>
</compile_context>

<pallas_src>
import functools
import math

import jax
import jax.numpy as jnp
from jax.experimental import pallas as pl
from jax.experimental.pallas import tpu as pltpu


def _round_up(n, m):
    return ((n + m - 1) // m) * m


def _coupling_kernel(x_ref, mask_ref,
                     ws1, bs1, ws2, bs2, ws3, bs3,
                     wt1, bt1, wt2, bt2, wt3, bt3,
                     y_ref, ldj_ref,
                     *, s_tanh_activation, smooth_activation, direct):
    x = x_ref[...]                      # (TB, D) f32
    mask = mask_ref[...]                # (1, D)  f32
    inv_mask = 1.0 - mask

    # Masked input, cast once to bf16 for the MXU.
    x_m = (x * mask).astype(jnp.bfloat16)

    if smooth_activation:
        act = jax.nn.elu
    else:
        act = lambda v: jnp.maximum(v, 0.0)

    def mlp(w1, b1, w2, b2, w3, b3):
        h = jnp.dot(x_m, w1[...], preferred_element_type=jnp.float32) + b1[...]
        h = act(h).astype(jnp.bfloat16)
        h = jnp.dot(h, w2[...], preferred_element_type=jnp.float32) + b2[...]
        h = act(h).astype(jnp.bfloat16)
        return jnp.dot(h, w3[...], preferred_element_type=jnp.float32) + b3[...]

    s_out = mlp(ws1, bs1, ws2, bs2, ws3, bs3)
    if s_tanh_activation:
        s_out = jnp.tanh(s_out)
    s_out = s_out * inv_mask
    t_out = mlp(wt1, bt1, wt2, bt2, wt3, bt3) * inv_mask

    if direct:
        y = x * jnp.exp(s_out) + t_out
        ldj = jnp.sum(s_out, axis=-1, keepdims=True)
    else:
        y = (x - t_out) * jnp.exp(-s_out)
        ldj = -jnp.sum(s_out, axis=-1, keepdims=True)

    y_ref[...] = y.astype(y_ref.dtype)
    ldj_ref[...] = ldj.astype(ldj_ref.dtype)


def coupling_layer_forward(x, params, mask, *, mode="direct",
                           s_tanh_activation=True, smooth_activation=False,
                           block_b=256):
    """x: [B, D] f32; params: 12-tuple of (w [in,out], b [1,out]) for the s- and
    t-networks; mask: [D] f32. Returns (y [B, D], log_det_jacobian [B, 1])."""
    (ws1, bs1, ws2, bs2, ws3, bs3,
     wt1, bt1, wt2, bt2, wt3, bt3) = params
    B, D = x.shape
    H = ws1.shape[1]
    assert ws1.shape == (D, H) and ws2.shape == (H, H) and ws3.shape == (H, D)

    # bf16 weights: ~2x MXU throughput, half the resident-weight VMEM.
    wbf = lambda w: w.astype(jnp.bfloat16)
    ws1b, ws2b, ws3b = wbf(ws1), wbf(ws2), wbf(ws3)
    wt1b, wt2b, wt3b = wbf(wt1), wbf(wt2), wbf(wt3)

    mask2d = mask.reshape(1, D).astype(jnp.float32)

    # Batch tiling: pick an MXU-friendly tile, pad the batch (no assert).
    block_b_eff = min(block_b, _round_up(B, 8))
    B_pad = _round_up(B, block_b_eff)
    if B_pad != B:
        x = jnp.pad(x, ((0, B_pad - B), (0, 0)))
    grid = (B_pad // block_b_eff,)

    rep = lambda i: (0, 0)  # resident (untiled) weight / bias / mask blocks
    kernel = functools.partial(
        _coupling_kernel,
        s_tanh_activation=s_tanh_activation,
        smooth_activation=smooth_activation,
        direct=(mode == "direct"),
    )

    param_bytes = sum(int(a.size) * a.dtype.itemsize
                      for a in (ws1b, bs1, ws2b, bs2, ws3b, bs3,
                                wt1b, bt1, wt2b, bt2, wt3b, bt3, mask2d))
    cost = pl.CostEstimate(
        flops=int(2 * B_pad * 2 * (D * H + H * H + H * D)),
        transcendentals=int(B_pad * 2 * D),                     # tanh + exp
        bytes_accessed=int(param_bytes + x.size * 4 + B_pad * (D + 1) * 4),
    )

    y, ldj = pl.pallas_call(
        kernel,
        out_shape=(
            jax.ShapeDtypeStruct((B_pad, D), jnp.float32),
            jax.ShapeDtypeStruct((B_pad, 1), jnp.float32),
        ),
        grid_spec=pltpu.PrefetchScalarGridSpec(
            num_scalar_prefetch=0,
            grid=grid,
            in_specs=[
                pl.BlockSpec((block_b_eff, D), lambda i: (i, 0)),   # x tile
                pl.BlockSpec((1, D), rep),                          # mask
                pl.BlockSpec((D, H), rep), pl.BlockSpec((1, H), rep),  # s_fc1
                pl.BlockSpec((H, H), rep), pl.BlockSpec((1, H), rep),  # s_fc2
                pl.BlockSpec((H, D), rep), pl.BlockSpec((1, D), rep),  # s_fc3
                pl.BlockSpec((D, H), rep), pl.BlockSpec((1, H), rep),  # t_fc1
                pl.BlockSpec((H, H), rep), pl.BlockSpec((1, H), rep),  # t_fc2
                pl.BlockSpec((H, D), rep), pl.BlockSpec((1, D), rep),  # t_fc3
            ],
            out_specs=[
                pl.BlockSpec((block_b_eff, D), lambda i: (i, 0)),   # y
                pl.BlockSpec((block_b_eff, 1), lambda i: (i, 0)),   # log|det J|
            ],
        ),
        compiler_params=pltpu.CompilerParams(
            dimension_semantics=("parallel",),
        ),
        cost_estimate=cost,
    )(x, mask2d,
      ws1b, bs1, ws2b, bs2, ws3b, bs3,
      wt1b, bt1, wt2b, bt2, wt3b, bt3)

    if B_pad != B:
        y = y[:B]
        ldj = ldj[:B]
    return y, ldj


def init_params(key, input_dim, hid_dim):
    """PyTorch nn.Linear default init: U(-1/sqrt(fan_in), 1/sqrt(fan_in))."""
    ks = jax.random.split(key, 12)

    def linear(kw, kb, fan_in, fan_out):
        bound = 1.0 / math.sqrt(fan_in)
        w = jax.random.uniform(kw, (fan_in, fan_out), jnp.float32, -bound, bound)
        b = jax.random.uniform(kb, (1, fan_out), jnp.float32, -bound, bound)
        return w, b

    ws1, bs1 = linear(ks[0], ks[1], input_dim, hid_dim)
    ws2, bs2 = linear(ks[2], ks[3], hid_dim, hid_dim)
    ws3, bs3 = linear(ks[4], ks[5], hid_dim, input_dim)
    wt1, bt1 = linear(ks[6], ks[7], input_dim, hid_dim)
    wt2, bt2 = linear(ks[8], ks[9], hid_dim, hid_dim)
    wt3, bt3 = linear(ks[10], ks[11], hid_dim, input_dim)
    return (ws1, bs1, ws2, bs2, ws3, bs3, wt1, bt1, wt2, bt2, wt3, bt3)


def reference_forward(x, params, mask, mode="direct",
                      s_tanh_activation=True, smooth_activation=False):
    (ws1, bs1, ws2, bs2, ws3, bs3,
     wt1, bt1, wt2, bt2, wt3, bt3) = params
    mask = mask.reshape(1, -1)
    x_m = x * mask
    act = jax.nn.elu if smooth_activation else jax.nn.relu

    def mlp(w1, b1, w2, b2, w3, b3):
        h = act(x_m @ w1 + b1)
        h = act(h @ w2 + b2)
        return h @ w3 + b3

    s = mlp(ws1, bs1, ws2, bs2, ws3, bs3)
    if s_tanh_activation:
        s = jnp.tanh(s)
    s = s * (1.0 - mask)
    t = mlp(wt1, bt1, wt2, bt2, wt3, bt3) * (1.0 - mask)
    if mode == "direct":
        y = x * jnp.exp(s) + t
        ldj = jnp.sum(s, axis=-1, keepdims=True)
    else:
        y = (x - t) * jnp.exp(-s)
        ldj = -jnp.sum(s, axis=-1, keepdims=True)
    return y, ldj


if __name__ == "__main__":
    key = jax.random.PRNGKey(0)
    k_param, k_x = jax.random.split(key)

    B, D, H = 8, 16, 32
    mask = (jnp.arange(D) % 2).astype(jnp.float32)      # checkerboard mask
    params = init_params(k_param, D, H)
    x = jax.random.normal(k_x, (B, D), jnp.float32)

    # Direct pass.
    y, ldj = coupling_layer_forward(x, params, mask, mode="direct")
    y = jax.block_until_ready(y)
    ldj = jax.block_until_ready(ldj)

    y_ref, ldj_ref = reference_forward(x, params, mask, mode="direct")
    assert y.shape == (B, D) and ldj.shape == (B, 1), (y.shape, ldj.shape)
    assert jnp.allclose(y, y_ref, atol=5e-2, rtol=5e-2), \
        float(jnp.max(jnp.abs(y - y_ref)))
    assert jnp.allclose(ldj, ldj_ref, atol=5e-2, rtol=5e-2), \
        float(jnp.max(jnp.abs(ldj - ldj_ref)))

    # Inverse pass round-trip: inverse(direct(x)) == x (exact up to rounding).
    x_rec, _ = coupling_layer_forward(y, params, mask, mode="inverse")
    x_rec = jax.block_until_ready(x_rec)
    assert jnp.allclose(x_rec, x, atol=1e-3, rtol=1e-3), \
        float(jnp.max(jnp.abs(x_rec - x)))

    print("KERNEL_OK")
</pallas_src>

<mosaic_0001>
module attributes {stable_mosaic.version = 11 : i64} {
  func.func @_coupling_kernel(%arg0: i32, %arg1: memref<8x16xf32, #tpu.memory_space<vmem>>, %arg2: memref<1x16xf32, #tpu.memory_space<vmem>>, %arg3: memref<16x32xbf16, #tpu.memory_space<vmem>>, %arg4: memref<1x32xf32, #tpu.memory_space<vmem>>, %arg5: memref<32x32xbf16, #tpu.memory_space<vmem>>, %arg6: memref<1x32xf32, #tpu.memory_space<vmem>>, %arg7: memref<32x16xbf16, #tpu.memory_space<vmem>>, %arg8: memref<1x16xf32, #tpu.memory_space<vmem>>, %arg9: memref<16x32xbf16, #tpu.memory_space<vmem>>, %arg10: memref<1x32xf32, #tpu.memory_space<vmem>>, %arg11: memref<32x32xbf16, #tpu.memory_space<vmem>>, %arg12: memref<1x32xf32, #tpu.memory_space<vmem>>, %arg13: memref<32x16xbf16, #tpu.memory_space<vmem>>, %arg14: memref<1x16xf32, #tpu.memory_space<vmem>>, %arg15: memref<8x16xf32, #tpu.memory_space<vmem>>, %arg16: memref<8x1xf32, #tpu.memory_space<vmem>>) attributes {dimension_semantics = [#tpu.dimension_semantics<parallel>], iteration_bounds = array<i64: 1>, scalar_prefetch = 0 : i64, scratch_operands = 0 : i64, tpu.core_type = #tpu.core_type<tc>, window_params = [{transform_indices = @transform_0, window_bounds = array<i64: 8, 16>}, {pipeline_mode = #tpu.pipeline_mode<synchronous>, transform_indices = @transform_1, window_bounds = array<i64: 1, 16>}, {pipeline_mode = #tpu.pipeline_mode<synchronous>, transform_indices = @transform_2, window_bounds = array<i64: 16, 32>}, {pipeline_mode = #tpu.pipeline_mode<synchronous>, transform_indices = @transform_3, window_bounds = array<i64: 1, 32>}, {pipeline_mode = #tpu.pipeline_mode<synchronous>, transform_indices = @transform_4, window_bounds = array<i64: 32, 32>}, {pipeline_mode = #tpu.pipeline_mode<synchronous>, transform_indices = @transform_5, window_bounds = array<i64: 1, 32>}, {pipeline_mode = #tpu.pipeline_mode<synchronous>, transform_indices = @transform_6, window_bounds = array<i64: 32, 16>}, {pipeline_mode = #tpu.pipeline_mode<synchronous>, transform_indices = @transform_7, window_bounds = array<i64: 1, 16>}, {pipeline_mode = #tpu.pipeline_mode<synchronous>, transform_indices = @transform_8, window_bounds = array<i64: 16, 32>}, {pipeline_mode = #tpu.pipeline_mode<synchronous>, transform_indices = @transform_9, window_bounds = array<i64: 1, 32>}, {pipeline_mode = #tpu.pipeline_mode<synchronous>, transform_indices = @transform_10, window_bounds = array<i64: 32, 32>}, {pipeline_mode = #tpu.pipeline_mode<synchronous>, transform_indices = @transform_11, window_bounds = array<i64: 1, 32>}, {pipeline_mode = #tpu.pipeline_mode<synchronous>, transform_indices = @transform_12, window_bounds = array<i64: 32, 16>}, {pipeline_mode = #tpu.pipeline_mode<synchronous>, transform_indices = @transform_13, window_bounds = array<i64: 1, 16>}, {transform_indices = @transform_14, window_bounds = array<i64: 8, 16>}, {transform_indices = @transform_15, window_bounds = array<i64: 8, 1>}]} {
    %c0 = arith.constant 0 : index
    %c0_0 = arith.constant 0 : index
    %0 = vector.load %arg1[%c0, %c0_0] : memref<8x16xf32, #tpu.memory_space<vmem>>, vector<8x16xf32>
    %c0_1 = arith.constant 0 : index
    %c0_2 = arith.constant 0 : index
    %1 = vector.load %arg2[%c0_1, %c0_2] : memref<1x16xf32, #tpu.memory_space<vmem>>, vector<1x16xf32>
    %cst = arith.constant 1.000000e+00 : f32
    %2 = vector.broadcast %cst : f32 to vector<1x16xf32>
    %3 = arith.subf %2, %1 : vector<1x16xf32>
    %4 = vector.broadcast %1 : vector<1x16xf32> to vector<8x16xf32>
    %5 = arith.mulf %0, %4 : vector<8x16xf32>
    %6 = arith.truncf %5 : vector<8x16xf32> to vector<8x16xbf16>
    %c0_3 = arith.constant 0 : index
    %c0_4 = arith.constant 0 : index
    %7 = vector.load %arg3[%c0_3, %c0_4] : memref<16x32xbf16, #tpu.memory_space<vmem>>, vector<16x32xbf16>
    %cst_5 = arith.constant dense<0.000000e+00> : vector<8x32xf32>
    %8 = tpu.matmul %6, %7, %cst_5 {dimension_numbers = #tpu.dot_dimension_numbers<[1], [0], [0], [1], [0, 0, 1, 1], [], []>} : vector<8x16xbf16>, vector<16x32xbf16>, vector<8x32xf32> -> vector<8x32xf32>
    %c0_6 = arith.constant 0 : index
    %c0_7 = arith.constant 0 : index
    %9 = vector.load %arg4[%c0_6, %c0_7] : memref<1x32xf32, #tpu.memory_space<vmem>>, vector<1x32xf32>
    %10 = vector.broadcast %9 : vector<1x32xf32> to vector<8x32xf32>
    %11 = arith.addf %8, %10 : vector<8x32xf32>
    %cst_8 = arith.constant 0.000000e+00 : f32
    %12 = vector.broadcast %cst_8 : f32 to vector<8x32xf32>
    %13 = arith.maximumf %11, %12 : vector<8x32xf32>
    %14 = arith.truncf %13 : vector<8x32xf32> to vector<8x32xbf16>
    %c0_9 = arith.constant 0 : index
    %c0_10 = arith.constant 0 : index
    %15 = vector.load %arg5[%c0_9, %c0_10] : memref<32x32xbf16, #tpu.memory_space<vmem>>, vector<32x32xbf16>
    %cst_11 = arith.constant dense<0.000000e+00> : vector<8x32xf32>
    %16 = tpu.matmul %14, %15, %cst_11 {dimension_numbers = #tpu.dot_dimension_numbers<[1], [0], [0], [1], [0, 0, 1, 1], [], []>} : vector<8x32xbf16>, vector<32x32xbf16>, vector<8x32xf32> -> vector<8x32xf32>
    %c0_12 = arith.constant 0 : index
    %c0_13 = arith.constant 0 : index
    %17 = vector.load %arg6[%c0_12, %c0_13] : memref<1x32xf32, #tpu.memory_space<vmem>>, vector<1x32xf32>
    %18 = vector.broadcast %17 : vector<1x32xf32> to vector<8x32xf32>
    %19 = arith.addf %16, %18 : vector<8x32xf32>
    %cst_14 = arith.constant 0.000000e+00 : f32
    %20 = vector.broadcast %cst_14 : f32 to vector<8x32xf32>
    %21 = arith.maximumf %19, %20 : vector<8x32xf32>
    %22 = arith.truncf %21 : vector<8x32xf32> to vector<8x32xbf16>
    %c0_15 = arith.constant 0 : index
    %c0_16 = arith.constant 0 : index
    %23 = vector.load %arg7[%c0_15, %c0_16] : memref<32x16xbf16, #tpu.memory_space<vmem>>, vector<32x16xbf16>
    %cst_17 = arith.constant dense<0.000000e+00> : vector<8x16xf32>
    %24 = tpu.matmul %22, %23, %cst_17 {dimension_numbers = #tpu.dot_dimension_numbers<[1], [0], [0], [1], [0, 0, 1, 1], [], []>} : vector<8x32xbf16>, vector<32x16xbf16>, vector<8x16xf32> -> vector<8x16xf32>
    %c0_18 = arith.constant 0 : index
    %c0_19 = arith.constant 0 : index
    %25 = vector.load %arg8[%c0_18, %c0_19] : memref<1x16xf32, #tpu.memory_space<vmem>>, vector<1x16xf32>
    %26 = vector.broadcast %25 : vector<1x16xf32> to vector<8x16xf32>
    %27 = arith.addf %24, %26 : vector<8x16xf32>
    %28 = math.tanh %27 : vector<8x16xf32>
    %29 = vector.broadcast %3 : vector<1x16xf32> to vector<8x16xf32>
    %30 = arith.mulf %28, %29 : vector<8x16xf32>
    %c0_20 = arith.constant 0 : index
    %c0_21 = arith.constant 0 : index
    %31 = vector.load %arg9[%c0_20, %c0_21] : memref<16x32xbf16, #tpu.memory_space<vmem>>, vector<16x32xbf16>
    %cst_22 = arith.constant dense<0.000000e+00> : vector<8x32xf32>
    %32 = tpu.matmul %6, %31, %cst_22 {dimension_numbers = #tpu.dot_dimension_numbers<[1], [0], [0], [1], [0, 0, 1, 1], [], []>} : vector<8x16xbf16>, vector<16x32xbf16>, vector<8x32xf32> -> vector<8x32xf32>
    %c0_23 = arith.constant 0 : index
    %c0_24 = arith.constant 0 : index
    %33 = vector.load %arg10[%c0_23, %c0_24] : memref<1x32xf32, #tpu.memory_space<vmem>>, vector<1x32xf32>
    %34 = vector.broadcast %33 : vector<1x32xf32> to vector<8x32xf32>
    %35 = arith.addf %32, %34 : vector<8x32xf32>
    %cst_25 = arith.constant 0.000000e+00 : f32
    %36 = vector.broadcast %cst_25 : f32 to vector<8x32xf32>
    %37 = arith.maximumf %35, %36 : vector<8x32xf32>
    %38 = arith.truncf %37 : vector<8x32xf32> to vector<8x32xbf16>
    %c0_26 = arith.constant 0 : index
    %c0_27 = arith.constant 0 : index
    %39 = vector.load %arg11[%c0_26, %c0_27] : memref<32x32xbf16, #tpu.memory_space<vmem>>, vector<32x32xbf16>
    %cst_28 = arith.constant dense<0.000000e+00> : vector<8x32xf32>
    %40 = tpu.matmul %38, %39, %cst_28 {dimension_numbers = #tpu.dot_dimension_numbers<[1], [0], [0], [1], [0, 0, 1, 1], [], []>} : vector<8x32xbf16>, vector<32x32xbf16>, vector<8x32xf32> -> vector<8x32xf32>
    %c0_29 = arith.constant 0 : index
    %c0_30 = arith.constant 0 : index
    %41 = vector.load %arg12[%c0_29, %c0_30] : memref<1x32xf32, #tpu.memory_space<vmem>>, vector<1x32xf32>
    %42 = vector.broadcast %41 : vector<1x32xf32> to vector<8x32xf32>
    %43 = arith.addf %40, %42 : vector<8x32xf32>
    %cst_31 = arith.constant 0.000000e+00 : f32
    %44 = vector.broadcast %cst_31 : f32 to vector<8x32xf32>
    %45 = arith.maximumf %43, %44 : vector<8x32xf32>
    %46 = arith.truncf %45 : vector<8x32xf32> to vector<8x32xbf16>
    %c0_32 = arith.constant 0 : index
    %c0_33 = arith.constant 0 : index
    %47 = vector.load %arg13[%c0_32, %c0_33] : memref<32x16xbf16, #tpu.memory_space<vmem>>, vector<32x16xbf16>
    %cst_34 = arith.constant dense<0.000000e+00> : vector<8x16xf32>
    %48 = tpu.matmul %46, %47, %cst_34 {dimension_numbers = #tpu.dot_dimension_numbers<[1], [0], [0], [1], [0, 0, 1, 1], [], []>} : vector<8x32xbf16>, vector<32x16xbf16>, vector<8x16xf32> -> vector<8x16xf32>
    %c0_35 = arith.constant 0 : index
    %c0_36 = arith.constant 0 : index
    %49 = vector.load %arg14[%c0_35, %c0_36] : memref<1x16xf32, #tpu.memory_space<vmem>>, vector<1x16xf32>
    %50 = vector.broadcast %49 : vector<1x16xf32> to vector<8x16xf32>
    %51 = arith.addf %48, %50 : vector<8x16xf32>
    %52 = vector.broadcast %3 : vector<1x16xf32> to vector<8x16xf32>
    %53 = arith.mulf %51, %52 : vector<8x16xf32>
    %54 = math.exp %30 : vector<8x16xf32>
    %55 = arith.mulf %0, %54 : vector<8x16xf32>
    %56 = arith.addf %55, %53 : vector<8x16xf32>
    %cst_37 = arith.constant dense<0.000000e+00> : vector<8xf32>
    %57 = vector.multi_reduction <add>, %30, %cst_37 [1] : vector<8x16xf32> to vector<8xf32>
    %58 = vector.shape_cast %57 : vector<8xf32> to vector<8x1xf32>
    %c0_38 = arith.constant 0 : index
    %c0_39 = arith.constant 0 : index
    %59 = vector.load %arg15[%c0_38, %c0_39] : memref<8x16xf32, #tpu.memory_space<vmem>>, vector<8x16xf32>
    tpu.vector_store %arg15[%c0_38, %c0_39], %56 {strides = array<i32>} : memref<8x16xf32, #tpu.memory_space<vmem>>, vector<8x16xf32>,
    %c0_40 = arith.constant 0 : index
    %c0_41 = arith.constant 0 : index
    %60 = vector.load %arg16[%c0_40, %c0_41] : memref<8x1xf32, #tpu.memory_space<vmem>>, vector<8x1xf32>
    tpu.vector_store %arg16[%c0_40, %c0_41], %58 {strides = array<i32>} : memref<8x1xf32, #tpu.memory_space<vmem>>, vector<8x1xf32>,
    return
  }
  func.func @transform_0(%arg0: i32) -> (i32, i32) {
    %c0_i32 = arith.constant 0 : i32
    %c0_i32_0 = arith.constant 0 : i32
    return %arg0, %c0_i32 : i32, i32
  }
  func.func @transform_1(%arg0: i32) -> (i32, i32) {
    %c0_i32 = arith.constant 0 : i32
    %c0_i32_0 = arith.constant 0 : i32
    %c0_i32_1 = arith.constant 0 : i32
    return %c0_i32, %c0_i32_0 : i32, i32
  }
  func.func @transform_2(%arg0: i32) -> (i32, i32) {
    %c0_i32 = arith.constant 0 : i32
    %c0_i32_0 = arith.constant 0 : i32
    %c0_i32_1 = arith.constant 0 : i32
    return %c0_i32, %c0_i32_0 : i32, i32
  }
  func.func @transform_3(%arg0: i32) -> (i32, i32) {
    %c0_i32 = arith.constant 0 : i32
    %c0_i32_0 = arith.constant 0 : i32
    %c0_i32_1 = arith.constant 0 : i32
    return %c0_i32, %c0_i32_0 : i32, i32
  }
  func.func @transform_4(%arg0: i32) -> (i32, i32) {
    %c0_i32 = arith.constant 0 : i32
    %c0_i32_0 = arith.constant 0 : i32
    %c0_i32_1 = arith.constant 0 : i32
    return %c0_i32, %c0_i32_0 : i32, i32
  }
  func.func @transform_5(%arg0: i32) -> (i32, i32) {
    %c0_i32 = arith.constant 0 : i32
    %c0_i32_0 = arith.constant 0 : i32
    %c0_i32_1 = arith.constant 0 : i32
    return %c0_i32, %c0_i32_0 : i32, i32
  }
  func.func @transform_6(%arg0: i32) -> (i32, i32) {
    %c0_i32 = arith.constant 0 : i32
    %c0_i32_0 = arith.constant 0 : i32
    %c0_i32_1 = arith.constant 0 : i32
    return %c0_i32, %c0_i32_0 : i32, i32
  }
  func.func @transform_7(%arg0: i32) -> (i32, i32) {
    %c0_i32 = arith.constant 0 : i32
    %c0_i32_0 = arith.constant 0 : i32
    %c0_i32_1 = arith.constant 0 : i32
    return %c0_i32, %c0_i32_0 : i32, i32
  }
  func.func @transform_8(%arg0: i32) -> (i32, i32) {
    %c0_i32 = arith.constant 0 : i32
    %c0_i32_0 = arith.constant 0 : i32
    %c0_i32_1 = arith.constant 0 : i32
    return %c0_i32, %c0_i32_0 : i32, i32
  }
  func.func @transform_9(%arg0: i32) -> (i32, i32) {
    %c0_i32 = arith.constant 0 : i32
    %c0_i32_0 = arith.constant 0 : i32
    %c0_i32_1 = arith.constant 0 : i32
    return %c0_i32, %c0_i32_0 : i32, i32
  }
  func.func @transform_10(%arg0: i32) -> (i32, i32) {
    %c0_i32 = arith.constant 0 : i32
    %c0_i32_0 = arith.constant 0 : i32
    %c0_i32_1 = arith.constant 0 : i32
    return %c0_i32, %c0_i32_0 : i32, i32
  }
  func.func @transform_11(%arg0: i32) -> (i32, i32) {
    %c0_i32 = arith.constant 0 : i32
    %c0_i32_0 = arith.constant 0 : i32
    %c0_i32_1 = arith.constant 0 : i32
    return %c0_i32, %c0_i32_0 : i32, i32
  }
  func.func @transform_12(%arg0: i32) -> (i32, i32) {
    %c0_i32 = arith.constant 0 : i32
    %c0_i32_0 = arith.constant 0 : i32
    %c0_i32_1 = arith.constant 0 : i32
    return %c0_i32, %c0_i32_0 : i32, i32
  }
  func.func @transform_13(%arg0: i32) -> (i32, i32) {
    %c0_i32 = arith.constant 0 : i32
    %c0_i32_0 = arith.constant 0 : i32
    %c0_i32_1 = arith.constant 0 : i32
    return %c0_i32, %c0_i32_0 : i32, i32
  }
  func.func @transform_14(%arg0: i32) -> (i32, i32) {
    %c0_i32 = arith.constant 0 : i32
    %c0_i32_0 = arith.constant 0 : i32
    return %arg0, %c0_i32 : i32, i32
  }
  func.func @transform_15(%arg0: i32) -> (i32, i32) {
    %c0_i32 = arith.constant 0 : i32
    %c0_i32_0 = arith.constant 0 : i32
    return %arg0, %c0_i32 : i32, i32
  }
}

</mosaic_0001>

<bundles_post_ra>
// kernel: tpu_custom_call.1
= control target key start
LH: loop header
LB: loop body
LE: loop exit
PB: predicated region body
PF: predicated region fallthrough
CT: control target
= control target key end

     0   :  { %21 = vsyncpa [#allocation3], 0  ;;  %s908_s0 = inlined_call_operand.vmem [shape: f32[8,16], index: 0, kind: input, shape index: {}]   ;;  %s909_s1 = inlined_call_operand.vmem [shape: f32[1,16], index: 1, kind: input, shape index: {}]   ;;  %s910_s2 = inlined_call_operand.hbm [shape: bf16[16,32], index: 2, kind: input, shape index: {}]   ;;  %s911_s3 = inlined_call_operand.vmem [shape: f32[1,32], index: 3, kind: input, shape index: {}]   ;;  %s912_s4 = inlined_call_operand.vmem [shape: bf16[32,32], index: 4, kind: input, shape index: {}]   ;;  %s913_s5 = inlined_call_operand.hbm [shape: f32[1,32], index: 5, kind: input, shape index: {}]   ;;  %s914_s6 = inlined_call_operand.vmem [shape: bf16[32,16], index: 6, kind: input, shape index: {}]   ;;  %s915_s7 = inlined_call_operand.vmem [shape: f32[1,16], index: 7, kind: input, shape index: {}]   ;;  %s916_s8 = inlined_call_operand.vmem [shape: bf16[16,32], index: 8, kind: input, shape index: {}]   ;;  %s917_s9 = inlined_call_operand.vmem [shape: f32[1,32], index: 9, kind: input, shape index: {}]   ;;  %s918_s10 = inlined_call_operand.vmem [shape: bf16[32,32], index: 10, kind: input, shape index: {}]   ;;  %s919_s11 = inlined_call_operand.vmem [shape: f32[1,32], index: 11, kind: input, shape index: {}]   ;;  %s920_s12 = inlined_call_operand.vmem [shape: bf16[32,16], index: 12, kind: input, shape index: {}]   ;;  %s921_s13 = inlined_call_operand.vmem [shape: f32[1,16], index: 13, kind: input, shape index: {}]   ;;  %s922_s14 = inlined_call_operand.hbm [shape: f32[8,16], index: 14, kind: output, shape index: {0}]   ;;  %s923_s15 = inlined_call_operand.vmem [shape: f32[8,1], index: 15, kind: output, shape index: {1}]  }
   0x1   :  { %22 = vsyncpa [#allocation6], 0 }
   0x2   :  { %23 = vsyncpa [#allocation4], 0  ;;  %s689_s18 = smov [#allocation2]   ;;  %s617_s22 = scalar_lea.hbm %s910_s2, 128 }
   0x3   :  { %s33_s19 = sshll.u32 %s689_s18, 4  ;;  %p618_p0 = scmp.ne.s32.totalorder %s910_s2, %s617_s22  ;;  %s34_s19 = int_to_ptr.vmem [resolvable:$true] %s33_s19 }
   0x4   :  { %p621_p1 = scmp.lt.u32.totalorder %s617_s22, %s910_s2 }
   0x6   :  { %p623_p2 = pnand %p621_p1, %p618_p0 }
   0x8   :  { %626 = shalt.err (!%p623_p2)
}
   0x9   :  { %s627_s27 = scalar_lea.vmem %s34_s19, 128  ;;  %p632_p4 = scmp.lt.s32.totalorder %s34_s19, %s34_s19 }
   0xa   :  { %p628_p3 = scmp.ne.s32.totalorder %s34_s19, %s627_s27  ;;  %p633_p5 = scmp.lt.s32.totalorder %s627_s27, %s627_s27 }
   0xc   :  { %p634_p6 = por %p633_p5, %p632_p4 }
   0xe   :  { %p635_p7 = pnand %p634_p6, %p628_p3 }
  0x10   :  { %638 = shalt.err (!%p635_p7)
}
  0x11   :  { %s690_s28 = smov 64   ;;  %s691_s29 = smov 4  }
  0x12   :  { %39 = dma.hbm_to_vmem [thread:$0]  %s910_s2, 128, %s34_s19, [#allocation3], %s690_s28, %s690_s28, %s691_s29  }
  0x13   :  { %s692_s17 = smov [#allocation5]   ;;  %s639_s22 = scalar_lea.hbm %s913_s5, 16 }
  0x14   :  { %s50_s18 = sshll.u32 %s692_s17, 4  ;;  %p640_p8 = scmp.ne.s32.totalorder %s913_s5, %s639_s22  ;;  %s51_s18 = int_to_ptr.vmem [resolvable:$true] %s50_s18 }
  0x15   :  { %p643_p9 = scmp.lt.u32.totalorder %s639_s22, %s913_s5 }
  0x17   :  { %p645_p10 = pnand %p643_p9, %p640_p8 }
  0x19   :  { %648 = shalt.err (!%p645_p10)
}
  0x1a   :  { %s649_s27 = scalar_lea.vmem %s51_s18, 16  ;;  %s653_s2 = scalar_lea.vmem %s51_s18, 32 }
  0x1b   :  { %p650_p11 = scmp.ne.s32.totalorder %s51_s18, %s649_s27  ;;  %p654_p12 = scmp.lt.s32.totalorder %s51_s18, %s51_s18 }
  0x1c   :  { %p655_p13 = scmp.lt.s32.totalorder %s653_s2, %s649_s27 }
  0x1e   :  { %p656_p0 = por %p655_p13, %p654_p12 }
  0x20   :  { %p657_p1 = pnand %p656_p0, %p650_p11 }
  0x22   :  { %660 = shalt.err (!%p657_p1)
}
  0x23   :  { %53 = dma.hbm_to_vmem [thread:$0]  %s913_s5, 16, %s51_s18, [#allocation6]  }
  0x24   :  { %683 = dma.done.wait [#allocation3], 128  }
  0x25   :  { %684 = vsyncadd [#allocation3], 4294967168 }
  0x26   :  { %685 = dma.done.wait [#allocation6], 16  }
  0x27   :  { %686 = vsyncadd [#allocation6], 4294967280  ;;  %v81_v0 = vlaneseq  ;;  %v693_v1 = vmov 0.0   ;;  %vm694_vm0 = vmmov 0   ;;  %v603_v4 = vld [vmem:[#allocation2] sm:$0xff]   ;;  %vm103_vm1 = vcmask 130048  }
  0x28   :  { %552 = vmatprep.subr.bf16.mxu0 %v693_v1  ;;  %554 = vmatprep.mubr.msk.bf16.mxu0 %vm694_vm0, %v693_v1  ;;  %v812_v5 = vld [vmem:[%s908_s0] sm:$0xff]  ;;  %v605_v11 = vld [vmem:[%s912_s4 + $0x8] sm:$0xff]   ;;  %vm172_vm2 = vcmask 261120   ;;  %vm492_vm3 = vcmask 7168   ;;  %s695_s0 = smov [#allocation7]  }
  0x29   :  { %v803_v2 = vshrl.u32 %v81_v0, 7  ;;  %558 = vmatprep.subr.bf16.mxu1 %v693_v1  ;;  %562 = vmatprep.mubr.msk.bf16.mxu1 %vm694_vm0, %v693_v1  ;;  %v817_v6 = vld [vmem:[%s909_s1] sm:$0x1]  ;;  %v608_v22 = vld [vmem:[%s914_s6 + $0x8] sm:$0xff]   ;;  %s500_s1 = sshll.u32 %s695_s0, 4  ;;  %s501_s1 = int_to_ptr.vmem [resolvable:$true] %s500_s1 }
  0x2a   :  { %553 = vmatpush3.bf16.msra.mxu0 %v603_v4  ;;  %v604_v8 = vld [vmem:[%s912_s4] sm:$0xff]   ;;  %v517_v23 = vld [vmem:[#allocation5] ss:$0 sm:$0xff]  ;;  %v79_v50 = vsub.f32 1.0, %v817_v6  ;;  %p666_p3 = scmp.lt.s32.totalorder %s501_s1, %s501_s1 }
  0x2b   :  { %v83_v3 = vsub.s32 0, %v803_v2  ;;  %566 = vmatprep.subr.bf16.mxu0 %v693_v1  ;;  %559 = vmatpush3.bf16.msra.mxu1 %v604_v8  ;;  %v607_v12 = vld [vmem:[%s914_s6] sm:$0xff]   ;;  %v610_v34 = vld [vmem:[%s918_s10 + $0x8] sm:$0xff]  }
  0x2c   :  { %560 = vmatprep.subr.bf16.mxu1 %v693_v1  ;;  %v514_v13 = vld [vmem:[%s911_s3] ss:$0 sm:$0xff]  ;;  %v612_v42 = vld [vmem:[%s920_s12 + $0x8] sm:$0xff]  }
  0x2d   :  { %v84_v7 = vrot.slane %v817_v6, %v83_v3  ;;  %v606_v20 = vld [vmem:[%s916_s8] sm:$0xff]   ;;  %v289_v55 = vrot.slane %v79_v50, %v83_v3 }
  0x2e   :  { %v609_v30 = vld [vmem:[%s918_s10] sm:$0xff]  }
  0x2f   :  { %v86_v9 = vmul.f32 %v84_v7, %v812_v5  ;;  %561 = vmatpush3.bf16.msra.mxu1 %v605_v11  ;;  %v525_v32 = vld [vmem:[%s917_s9] ss:$0 sm:$0xff] }
  0x30   :  { %574 = vmatprep.subr.bf16.mxu1 %v693_v1  ;;  %v611_v41 = vld [vmem:[%s920_s12] sm:$0xff]  }
  0x31   :  { %v87_v10 = vpack.c.bf16 %v86_v9, %v86_v9  ;;  %v521_v43 = vld [vmem:[%s915_s7] ss:$0 sm:$0xff] }
  0x32   :  { %v528_v49 = vld [vmem:[%s919_s11] ss:$0 sm:$0xff] }
  0x33   :  { %555 = vmatmul.mubr.msk.bf16.vlgmr.msra.gmra.mrb[0].mxu0 %vm103_vm1, %v87_v10  ;;  %v532_v0 = vld [vmem:[%s921_s13] ss:$0 sm:$0xff] }
  0x34   :  { %570 = vmatprep.mubr.msk.bf16.mxu0 %vm694_vm0, %v693_v1  ;;  %567 = vmatpush3.bf16.msra.mxu0 %v607_v12 }
  0x35   :  { %568 = vmatprep.subr.bf16.mxu0 %v693_v1 }
  0x38   :  { %569 = vmatpush3.bf16.msra.mxu0 %v608_v22 }
  0x39   :  { %580 = vmatprep.subr.bf16.mxu0 %v693_v1 }
 0x106   :  { %v141_v14 = vpop.f32.mrb[0].mxu0 }
 0x107   :  { %v142_v15 = vadd.f32 %v514_v13, %v141_v14  ;;  %v556_v16 = vpop.f32.mrb[1].mxu0 }
 0x108   :  { %v144_v17 = vpop.f32.mrb[2].mxu0 }
 0x109   :  { %v147_v18 = vmax.f32 %v142_v15, 0.0  ;;  %v557_v19 = vpop.f32.mrb[3].mxu0 }
 0x10b   :  { %v148_v21 = vpack.c.bf16 %v147_v18, %v147_v18 }
 0x10d   :  { %563 = vmatmul.mubr.msk.bf16.vlgmr.msra.gmra.mrb[0].mxu1 %vm172_vm2, %v148_v21 }
 0x10e   :  { %575 = vmatpush3.bf16.msra.mxu1 %v606_v20  ;;  %576 = vmatprep.mubr.msk.bf16.mxu1 %vm694_vm0, %v693_v1 }
 0x10f   :  { %588 = vmatprep.subr.bf16.mxu1 %v693_v1 }
 0x115   :  { %577 = vmatmul.mubr.msk.bf16.vlgmr.msra.gmra.mrb[4].mxu1 %vm103_vm1, %v87_v10 }
 0x116   :  { %592 = vmatprep.mubr.msk.bf16.mxu1 %vm694_vm0, %v693_v1  ;;  %589 = vmatpush3.bf16.msra.mxu1 %v611_v41 }
 0x117   :  { %590 = vmatprep.subr.bf16.mxu1 %v693_v1 }
 0x11a   :  { %591 = vmatpush3.bf16.msra.mxu1 %v612_v42 }
 0x1e0   :  { %v210_v24 = vpop.f32.mrb[0].mxu1 }
 0x1e1   :  { %v211_v25 = vadd.f32 %v517_v23, %v210_v24  ;;  %v564_v26 = vpop.f32.mrb[1].mxu1 }
 0x1e2   :  { %v213_v27 = vpop.f32.mrb[2].mxu1 }
 0x1e3   :  { %v216_v28 = vmax.f32 %v211_v25, 0.0  ;;  %v565_v29 = vpop.f32.mrb[3].mxu1 }
 0x1e5   :  { %v217_v31 = vpack.c.bf16 %v216_v28, %v216_v28 }
 0x1e7   :  { %571 = vmatmul.mubr.msk.bf16.vlgmr.msra.gmra.mrb[4].mxu0 %vm172_vm2, %v217_v31 }
 0x1e8   :  { %581 = vmatpush3.bf16.msra.mxu0 %v609_v30  ;;  %v341_v33 = vpop.f32.mrb[4].mxu1  ;;  %584 = vmatprep.mubr.msk.bf16.mxu0 %vm694_vm0, %v693_v1 }
 0x1e9   :  { %v342_v35 = vadd.f32 %v525_v32, %v341_v33  ;;  %v578_v36 = vpop.f32.mrb[5].mxu1  ;;  %582 = vmatprep.subr.bf16.mxu0 %v693_v1 }
 0x1ea   :  { %v344_v37 = vpop.f32.mrb[6].mxu1 }
 0x1eb   :  { %v347_v38 = vmax.f32 %v342_v35, 0.0  ;;  %v579_v39 = vpop.f32.mrb[7].mxu1 }
 0x1ec   :  { %583 = vmatpush3.bf16.msra.mxu0 %v610_v34 }
 0x1ed   :  { %v348_v40 = vpack.c.bf16 %v347_v38, %v347_v38 }
 0x1ef   :  { %585 = vmatmul.mubr.msk.bf16.vlgmr.msra.gmra.mrb[8].mxu0 %vm172_vm2, %v348_v40 }
 0x2ba   :  { %v278_v44 = vpop.f32.mrb[4].mxu0 }
 0x2bb   :  { %v279_v45 = vadd.f32 %v521_v43, %v278_v44  ;;  %v572_v46 = vpop.f32.mrb[5].mxu0 }
 0x2bc   :  { %v281_v47 = vpop.f32.mrb[6].mxu0 }
 0x2bd   :  { %613 = vtanh.f32 %v279_v45  ;;  %v573_v48 = vpop.f32.mrb[7].mxu0 }
 0x2c2   :  { %v409_v51 = vpop.f32.mrb[8].mxu0 }
 0x2c3   :  { %v410_v52 = vadd.f32 %v528_v49, %v409_v51  ;;  %v586_v53 = vpop.f32.mrb[9].mxu0 }
 0x2c4   :  { %v412_v54 = vpop.f32.mrb[10].mxu0 }
 0x2c5   :  { %v415_v56 = vmax.f32 %v410_v52, 0.0  ;;  %v587_v57 = vpop.f32.mrb[11].mxu0 }
 0x2c7   :  { %v614_v58 = vpop.eup %613  ;;  %v416_v59 = vpack.c.bf16 %v415_v56, %v415_v56 }
 0x2c8   :  { %v291_v60 = vmul.f32 %v614_v58, %v289_v55 }
 0x2c9   :  { %593 = vmatmul.mubr.msk.bf16.vlgmr.msra.gmra.mrb[8].mxu1 %vm172_vm2, %v416_v59 }
 0x2ca   :  { %v488_v61 = vsel %vm103_vm1, %v291_v60, 0.0  ;;  %v484_v63 = vmul.f32 1.442695, %v291_v60 }
 0x2cb   :  { %489 = vadd.xlane.f32.xlu0 %v488_v61 }
 0x2cc   :  { %615 = vpow2.f32 %v484_v63 }
 0x2d6   :  { %v616_v1 = vpop.eup %615 }
 0x2d7   :  { %v486_v8 = vmul.f32 %v616_v1, %v812_v5 }
 0x358   :  { %v490_v62 = vpop.xlane.xlu0 %489 }
 0x359   :  { %493 = vst.msk [vmem:[%s923_s15] sm:$0xff] %vm492_vm3, %v490_v62  ;;  %s661_s15 = scalar_lea.vmem %s501_s1, 128 }
 0x35a   :  { %p662_p2 = scmp.ne.s32.totalorder %s501_s1, %s661_s15  ;;  %p667_p4 = scmp.lt.s32.totalorder %s661_s15, %s661_s15 }
 0x35c   :  { %p668_p5 = por %p667_p4, %p666_p3 }
 0x35e   :  { %p669_p6 = pnand %p668_p5, %p662_p2 }
 0x39c   :  { %v477_v2 = vpop.f32.mrb[8].mxu1 }
 0x39d   :  { %v478_v3 = vadd.f32 %v532_v0, %v477_v2  ;;  %v594_v4 = vpop.f32.mrb[9].mxu1 }
 0x39e   :  { %v480_v6 = vpop.f32.mrb[10].mxu1 }
 0x39f   :  { %v483_v7 = vmul.f32 %v478_v3, %v289_v55  ;;  %v595_v9 = vpop.f32.mrb[11].mxu1 }
 0x3a1   :  { %v487_v10 = vadd.f32 %v486_v8, %v483_v7 }
 0x3a3   :  { %491 = vst.msk [vmem:[#allocation7] sm:$0xff] %vm103_vm1, %v487_v10 }
 0x3a4   :  { %672 = shalt.err (!%p669_p6)
}
 0x3a5   :  { %s673_s21 = scalar_lea.hbm %s922_s14, 128 }
 0x3a6   :  { %p674_p7 = scmp.ne.s32.totalorder %s922_s14, %s673_s21  ;;  %p677_p8 = scmp.lt.u32.totalorder %s673_s21, %s922_s14 }
 0x3a8   :  { %p679_p9 = pnand %p677_p8, %p674_p7 }
 0x3aa   :  { %682 = shalt.err (!%p679_p9)
}
 0x3ab   :  { %503 = dma.vmem_to_hbm [thread:$0]  %s501_s1, 128, %s922_s14, [#allocation4]  }
 0x3ac   :  { %687 = dma.done.wait [#allocation4], 128  }
 0x3ad   :  { %688 = vsyncadd [#allocation4], 4294967168 }
 0x3ae   :  { %511 = vsyncpa [#allocation3], 1 }
 0x3af   :  { %512 = vsyncpa [#allocation6], 1 }
 0x3b0   :  { %513 = vsyncpa [#allocation4], 1 }

</bundles_post_ra>
